<compile_context>
chip_gen: v7x
topology: tpu7x:2x2x1
jax: 0.10.0
libtpu: 0.0.40
codegen_flags: <defaults>
</compile_context>

<pallas_src>
import functools

import jax
import jax.numpy as jnp
from jax.experimental import pallas as pl
from jax.experimental.pallas import tpu as pltpu


# ----------------------------------------------------------------------------
# Kernel
# ----------------------------------------------------------------------------
def _cluster_memory_kernel(x_ref, f_ref, idx_ref, m_out, l_out, sel_out,
                           *, tn, tiles_per_split):
    c = pl.program_id(0)          # N-axis split (one per TensorCore on 2-TC chips)
    j = pl.program_id(2)          # sequential N tile within the split

    # Output block index is constant in j, so the three (1, tb, 1) output
    # blocks stay resident in VMEM across the whole j sweep and double as the
    # online-softmax accumulators (no scratch buffers, no final copy).
    @pl.when(j == 0)
    def _():
        m_out[...] = jnp.full_like(m_out, -jnp.inf)
        l_out[...] = jnp.zeros_like(l_out)
        sel_out[...] = jnp.zeros_like(sel_out)

    # (tb, tn) scaled-logit tile: bf16 x bf16 -> f32 accumulation on the MXU.
    # Queries are already L2-normalized and pre-scaled by 1/temp.
    s = jnp.dot(x_ref[...], f_ref[...], preferred_element_type=jnp.float32)

    # Online softmax statistics along the streamed N axis.
    m_prev = m_out[0]                                           # (tb, 1)
    m_new = jnp.maximum(m_prev, jnp.max(s, axis=-1, keepdims=True))
    alpha = jnp.exp(m_prev - m_new)
    l_out[0] = alpha * l_out[0] + jnp.sum(jnp.exp(s - m_new),
                                          axis=-1, keepdims=True)
    m_out[0] = m_new

    # Logit at the target column: compare the step-invariant local lane iota
    # against (target - col0) — a (tb, 1) subtract per step, not a full
    # (tb, tn) add — then one masked reduce.
    col0 = (c * tiles_per_split + j) * tn
    tgt_local = idx_ref[...] - col0                             # (tb, 1) int32
    lane = jax.lax.broadcasted_iota(jnp.int32, s.shape, 1)
    sel_out[0] += jnp.sum(jnp.where(lane == tgt_local, s, 0.0),
                          axis=-1, keepdims=True)


# ----------------------------------------------------------------------------
# Sizing helpers (generation-aware)
# ----------------------------------------------------------------------------
def _tpu_vmem_capacity_bytes():
    try:
        info = pltpu.get_tpu_info()
        cap = getattr(info, "vmem_capacity_bytes", None)
        if isinstance(cap, int) and cap > 0:
            return cap
    except Exception:
        pass
    return 64 * 1024 * 1024


def _vmem_limit_bytes():
    cap = _tpu_vmem_capacity_bytes()
    if cap >= 128 * 1024 * 1024:
        return 64 * 1024 * 1024                    # v5e / v6e: half of 128 MiB
    return min(48 * 1024 * 1024, (cap * 3) // 4)   # v7x: stay under 64 MiB physical


def _num_tensorcores():
    try:
        info = pltpu.get_tpu_info()
        for attr in ("num_tensorcores", "tensorcore_count",
                     "num_cores", "core_count", "num_cores_per_chip"):
            v = getattr(info, attr, None)
            if isinstance(v, int) and 0 < v <= 8:
                return min(v, 2)
    except Exception:
        pass
    return 1


def _largest_lane_divisor(per_split, tn_max):
    """Largest 128-multiple divisor of per_split that is <= tn_max."""
    units = per_split // 128
    best, d = 1, 1
    while d * d <= units:
        if units % d == 0:
            for cand in (d, units // d):
                if cand * 128 <= tn_max and cand > best:
                    best = cand
        d += 1
    return best * 128


def _choose_tn(per_split, D, feat_bytes, tb, vmem_limit):
    # Target >= ~8 MiB of feature bytes per grid step (amortizes the ~0.35 us
    # per-step overhead and keeps each strided-DMA row well above 1 KiB),
    # bounded by the VMEM budget:
    #   2 double-buffered (D, tn) bf16 feature buffers + ~4 f32 (tb, tn) temps.
    headroom = 8 * 1024 * 1024
    budget = max(2 * 1024 * 1024, vmem_limit - headroom)
    per_lane = 2 * D * feat_bytes + 4 * 4 * tb
    cap_lanes = max(128, budget // per_lane)
    want_lanes = max(128, (8 * 1024 * 1024) // (D * feat_bytes))
    tn_max = int(min(cap_lanes, want_lanes, per_split))
    return _largest_lane_divisor(per_split, tn_max)


def _choose_tb(B):
    if B <= 256:
        return B
    for cand in range(256, 0, -8):     # multiples of 8 keep sublane tiling legal
        if B % cand == 0:
            return cand
    return B                           # fallback: whole batch resident


# ----------------------------------------------------------------------------
# Wrappers
# ----------------------------------------------------------------------------
def _prepare_queries(inputs, temp, feat_dtype):
    """L2-normalize rows, fold in 1/temp, cast to the streaming dtype."""
    x = inputs.astype(jnp.float32)
    x_n = x * jax.lax.rsqrt(
        jnp.maximum(jnp.sum(x * x, axis=1, keepdims=True), 1e-24))
    return (x_n * jnp.float32(1.0 / float(temp))).astype(feat_dtype)


def prepare_memory_bank(features, feat_dtype=jnp.bfloat16):
    """One-time conversion of the (N, D) bank into the persisted streaming
    layout: (D, N), narrow dtype, lane-dense in N.  Training code should keep
    the bank stored this way (fold the cast/transpose into the EMA update)."""
    return features.astype(feat_dtype).T


def cluster_memory_all_forward(inputs, targets, features_t, temp=0.05,
                               n_split=None, tn=None, tb=None):
    """Pallas forward of ClusterMemory_all.

    inputs:     (B, D) float  — query features (un-normalized)
    targets:    (B,)   int    — cluster indices
    features_t: (D, N) bf16   — memory bank in streaming layout
                                (see prepare_memory_bank)
    Returns the scalar loss = 1.1 * cross_entropy(logits / temp, targets).
    """
    B, D = inputs.shape
    Df, N = features_t.shape
    assert D == Df
    assert N % 128 == 0, "num_samples must tile by 128 lanes"
    feat_dtype = features_t.dtype
    feat_bytes = jnp.dtype(feat_dtype).itemsize

    # --- N-axis split (only buys anything on 2-TC chips) -------------------
    if n_split is None:
        n_split = _num_tensorcores()
    while n_split > 1 and N % (n_split * 128):
        n_split -= 1
    per_split = N // n_split

    # --- B tiling (bounds the f32 logit slab for huge batches) -------------
    if tb is None:
        tb = _choose_tb(B)
    assert B % tb == 0
    n_btiles = B // tb

    # --- VMEM budget & tn auto-sizing ---------------------------------------
    vmem_limit = _vmem_limit_bytes()
    if tn is None:
        tn = _choose_tn(per_split, D, feat_bytes, tb, vmem_limit)
    assert tn % 128 == 0 and per_split % tn == 0
    tiles_per_split = per_split // tn

    # --- hoisted query prep (tiny, once per call) ---------------------------
    xs = _prepare_queries(inputs, temp, feat_dtype)            # (B, D) bf16
    idx2d = targets.astype(jnp.int32).reshape(B, 1)

    out_spec = pl.BlockSpec((1, tb, 1), lambda c, b, j: (c, b, 0))
    part_shape = jax.ShapeDtypeStruct((n_split, B, 1), jnp.float32)
    kernel = functools.partial(_cluster_memory_kernel, tn=tn,
                               tiles_per_split=tiles_per_split)

    m_p, l_p, sel_p = pl.pallas_call(
        kernel,
        out_shape=[part_shape, part_shape, part_shape],
        grid_spec=pltpu.PrefetchScalarGridSpec(
            num_scalar_prefetch=0,
            grid=(n_split, n_btiles, tiles_per_split),
            in_specs=[
                pl.BlockSpec((tb, D), lambda c, b, j: (b, 0)),      # queries
                pl.BlockSpec((D, tn),
                             lambda c, b, j: (0, c * tiles_per_split + j)),
                pl.BlockSpec((tb, 1), lambda c, b, j: (b, 0)),      # targets
            ],
            out_specs=[out_spec, out_spec, out_spec],
        ),
        compiler_params=pltpu.CompilerParams(
            dimension_semantics=("parallel", "parallel", "arbitrary"),
            vmem_limit_bytes=vmem_limit),
    )(xs, features_t, idx2d)

    # Combine the per-split online-softmax partials (O(B), plain XLA).
    m = jnp.max(m_p, axis=0)                                   # (B, 1)
    l = jnp.sum(jnp.exp(m_p - m) * l_p, axis=0)                # (B, 1)
    sel = jnp.sum(sel_p, axis=0)                               # (B, 1)
    logp = sel - m - jnp.log(l)                                # log_softmax @ target
    ce = -jnp.mean(logp)
    # outputs1 == outputs2 in the forward pass, so both CE terms share logits.
    return ce + 0.1 * ce


def cluster_memory_all_forward_from_bank(inputs, targets, features,
                                         temp=0.05, **kw):
    # TODO(synk): this per-call cast+transpose adds ~3x HBM traffic; training
    # code should persist the bank via prepare_memory_bank() instead.
    return cluster_memory_all_forward(
        inputs, targets, prepare_memory_bank(features), temp=temp, **kw)


def _reference_forward(inputs, targets, features, temp=0.05,
                       feat_dtype=jnp.bfloat16):
    """Plain-JAX reference using the same storage precision as the kernel."""
    xs = _prepare_queries(inputs, temp, feat_dtype).astype(jnp.float32)
    f = features.astype(feat_dtype).astype(jnp.float32)
    logits = xs @ f.T
    logp = jax.nn.log_softmax(logits, axis=1)
    picked = logp[jnp.arange(inputs.shape[0]), targets]
    ce = -jnp.mean(picked)
    return ce + 0.1 * ce


if __name__ == "__main__":
    # Module hyper-params: num_features=D, num_samples=N (memory bank size).
    B, D, N = 8, 32, 256
    temp = 0.05

    key = jax.random.PRNGKey(0)
    k_in, k_feat, k_idx = jax.random.split(key, 3)

    inputs = jax.random.normal(k_in, (B, D), dtype=jnp.float32)
    # `features` is zero-initialized in __init__ and filled by the memory
    # updates during training; use a deterministic L2-normalized bank here.
    features = jax.random.normal(k_feat, (N, D), dtype=jnp.float32)
    features = features / jnp.linalg.norm(features, axis=1, keepdims=True)
    targets = jax.random.randint(k_idx, (B,), 0, N, dtype=jnp.int32)

    # Persisted streaming-layout bank (done once, not per forward call).
    bank_t = jax.block_until_ready(prepare_memory_bank(features))

    loss = cluster_memory_all_forward(inputs, targets, bank_t, temp=temp)
    loss = jax.block_until_ready(loss)

    ref = _reference_forward(inputs, targets, features, temp=temp,
                             feat_dtype=jnp.bfloat16)
    assert jnp.allclose(loss, ref, rtol=1e-3, atol=1e-3), (loss, ref)

    print("KERNEL_OK")
</pallas_src>

<mosaic_0001>
module attributes {stable_mosaic.version = 11 : i64} {
  func.func @_cluster_memory_kernel(%arg0: i32, %arg1: i32, %arg2: i32, %arg3: memref<8x32xbf16, #tpu.memory_space<vmem>>, %arg4: memref<32x256xbf16, #tpu.memory_space<vmem>>, %arg5: memref<8x1xi32, #tpu.memory_space<vmem>>, %arg6: memref<1x8x1xf32, #tpu.memory_space<vmem>>, %arg7: memref<1x8x1xf32, #tpu.memory_space<vmem>>, %arg8: memref<1x8x1xf32, #tpu.memory_space<vmem>>) attributes {dimension_semantics = [#tpu.dimension_semantics<parallel>, #tpu.dimension_semantics<parallel>, #tpu.dimension_semantics<arbitrary>], iteration_bounds = array<i64: 1, 1, 1>, scalar_prefetch = 0 : i64, scratch_operands = 0 : i64, tpu.core_type = #tpu.core_type<tc>, window_params = [{transform_indices = @transform_0, window_bounds = array<i64: 8, 32>}, {transform_indices = @transform_1, window_bounds = array<i64: 32, 256>}, {transform_indices = @transform_2, window_bounds = array<i64: 8, 1>}, {transform_indices = @transform_3, window_bounds = array<i64: 1, 8, 1>}, {transform_indices = @transform_4, window_bounds = array<i64: 1, 8, 1>}, {transform_indices = @transform_5, window_bounds = array<i64: 1, 8, 1>}]} {
    %c0_i32 = arith.constant 0 : i32
    %0 = arith.cmpi eq, %arg2, %c0_i32 : i32
    %1 = arith.extui %0 : i1 to i32
    %c0_i32_0 = arith.constant 0 : i32
    %2 = arith.cmpi ne, %1, %c0_i32_0 : i32
    scf.if %2 {
      %cst_28 = arith.constant 0xFF800000 : f32
      %47 = vector.broadcast %cst_28 : f32 to vector<1x8x1xf32>
      %c0_29 = arith.constant 0 : index
      %c0_30 = arith.constant 0 : index
      %c0_31 = arith.constant 0 : index
      %48 = vector.load %arg6[%c0_29, %c0_30, %c0_31] : memref<1x8x1xf32, #tpu.memory_space<vmem>>, vector<1x8x1xf32>
      tpu.vector_store %arg6[%c0_29, %c0_30, %c0_31], %47 {strides = array<i32>} : memref<1x8x1xf32, #tpu.memory_space<vmem>>, vector<1x8x1xf32>,
      %cst_32 = arith.constant 0.000000e+00 : f32
      %49 = vector.broadcast %cst_32 : f32 to vector<1x8x1xf32>
      %c0_33 = arith.constant 0 : index
      %c0_34 = arith.constant 0 : index
      %c0_35 = arith.constant 0 : index
      %50 = vector.load %arg7[%c0_33, %c0_34, %c0_35] : memref<1x8x1xf32, #tpu.memory_space<vmem>>, vector<1x8x1xf32>
      tpu.vector_store %arg7[%c0_33, %c0_34, %c0_35], %49 {strides = array<i32>} : memref<1x8x1xf32, #tpu.memory_space<vmem>>, vector<1x8x1xf32>,
      %cst_36 = arith.constant 0.000000e+00 : f32
      %51 = vector.broadcast %cst_36 : f32 to vector<1x8x1xf32>
      %c0_37 = arith.constant 0 : index
      %c0_38 = arith.constant 0 : index
      %c0_39 = arith.constant 0 : index
      %52 = vector.load %arg8[%c0_37, %c0_38, %c0_39] : memref<1x8x1xf32, #tpu.memory_space<vmem>>, vector<1x8x1xf32>
      tpu.vector_store %arg8[%c0_37, %c0_38, %c0_39], %51 {strides = array<i32>} : memref<1x8x1xf32, #tpu.memory_space<vmem>>, vector<1x8x1xf32>,
    } else {
    }
    %c0 = arith.constant 0 : index
    %c0_1 = arith.constant 0 : index
    %3 = vector.load %arg3[%c0, %c0_1] : memref<8x32xbf16, #tpu.memory_space<vmem>>, vector<8x32xbf16>
    %c0_2 = arith.constant 0 : index
    %c0_3 = arith.constant 0 : index
    %4 = vector.load %arg4[%c0_2, %c0_3] : memref<32x256xbf16, #tpu.memory_space<vmem>>, vector<32x256xbf16>
    %cst = arith.constant dense<0.000000e+00> : vector<8x256xf32>
    %5 = tpu.matmul %3, %4, %cst {dimension_numbers = #tpu.dot_dimension_numbers<[1], [0], [0], [1], [0, 0, 1, 1], [], []>} : vector<8x32xbf16>, vector<32x256xbf16>, vector<8x256xf32> -> vector<8x256xf32>
    %c0_4 = arith.constant 0 : index
    %c0_5 = arith.constant 0 : index
    %c0_6 = arith.constant 0 : index
    %6 = vector.load %arg6[%c0_4, %c0_5, %c0_6] : memref<1x8x1xf32, #tpu.memory_space<vmem>>, vector<1x8x1xf32>
    %7 = vector.shape_cast %6 : vector<1x8x1xf32> to vector<8x1xf32>
    %cst_7 = arith.constant dense<0xFF800000> : vector<8xf32>
    %8 = vector.multi_reduction <maximumf>, %5, %cst_7 [1] : vector<8x256xf32> to vector<8xf32>
    %9 = vector.shape_cast %8 : vector<8xf32> to vector<8x1xf32>
    %10 = arith.maximumf %7, %9 : vector<8x1xf32>
    %11 = arith.subf %7, %10 : vector<8x1xf32>
    %12 = math.exp %11 : vector<8x1xf32>
    %c0_8 = arith.constant 0 : index
    %c0_9 = arith.constant 0 : index
    %c0_10 = arith.constant 0 : index
    %13 = vector.load %arg7[%c0_8, %c0_9, %c0_10] : memref<1x8x1xf32, #tpu.memory_space<vmem>>, vector<1x8x1xf32>
    %14 = vector.shape_cast %13 : vector<1x8x1xf32> to vector<8x1xf32>
    %15 = arith.mulf %12, %14 : vector<8x1xf32>
    %16 = vector.broadcast %10 : vector<8x1xf32> to vector<8x256xf32>
    %17 = arith.subf %5, %16 : vector<8x256xf32>
    %18 = math.exp %17 : vector<8x256xf32>
    %cst_11 = arith.constant dense<0.000000e+00> : vector<8xf32>
    %19 = vector.multi_reduction <add>, %18, %cst_11 [1] : vector<8x256xf32> to vector<8xf32>
    %20 = vector.shape_cast %19 : vector<8xf32> to vector<8x1xf32>
    %21 = arith.addf %15, %20 : vector<8x1xf32>
    %c0_12 = arith.constant 0 : index
    %c0_13 = arith.constant 0 : index
    %c0_14 = arith.constant 0 : index
    %22 = vector.load %arg7[%c0_12, %c0_13, %c0_14] : memref<1x8x1xf32, #tpu.memory_space<vmem>>, vector<1x8x1xf32>
    %23 = vector.shape_cast %22 : vector<1x8x1xf32> to vector<8x1xf32>
    %24 = vector.shape_cast %21 : vector<8x1xf32> to vector<1x8x1xf32>
    tpu.vector_store %arg7[%c0_12, %c0_13, %c0_14], %24 {strides = array<i32>} : memref<1x8x1xf32, #tpu.memory_space<vmem>>, vector<1x8x1xf32>,
    %c0_15 = arith.constant 0 : index
    %c0_16 = arith.constant 0 : index
    %c0_17 = arith.constant 0 : index
    %25 = vector.load %arg6[%c0_15, %c0_16, %c0_17] : memref<1x8x1xf32, #tpu.memory_space<vmem>>, vector<1x8x1xf32>
    %26 = vector.shape_cast %25 : vector<1x8x1xf32> to vector<8x1xf32>
    %27 = vector.shape_cast %10 : vector<8x1xf32> to vector<1x8x1xf32>
    tpu.vector_store %arg6[%c0_15, %c0_16, %c0_17], %27 {strides = array<i32>} : memref<1x8x1xf32, #tpu.memory_space<vmem>>, vector<1x8x1xf32>,
    %c1_i32 = arith.constant 1 : i32
    %28 = arith.muli %arg0, %c1_i32 : i32
    %29 = arith.addi %28, %arg2 : i32
    %c256_i32 = arith.constant 256 : i32
    %30 = arith.muli %29, %c256_i32 : i32
    %c0_18 = arith.constant 0 : index
    %c0_19 = arith.constant 0 : index
    %31 = vector.load %arg5[%c0_18, %c0_19] : memref<8x1xi32, #tpu.memory_space<vmem>>, vector<8x1xi32>
    %32 = vector.broadcast %30 : i32 to vector<8x1xi32>
    %33 = arith.subi %31, %32 : vector<8x1xi32>
    %34 = tpu.iota {dimensions = array<i32: 1>} : vector<8x256xi32>
    %c0_20 = arith.constant 0 : index
    %c0_21 = arith.constant 0 : index
    %c0_22 = arith.constant 0 : index
    %35 = vector.load %arg8[%c0_20, %c0_21, %c0_22] : memref<1x8x1xf32, #tpu.memory_space<vmem>>, vector<1x8x1xf32>
    %36 = vector.shape_cast %35 : vector<1x8x1xf32> to vector<8x1xf32>
    %37 = vector.broadcast %33 : vector<8x1xi32> to vector<8x256xi32>
    %38 = arith.cmpi eq, %34, %37 : vector<8x256xi32>
    %cst_23 = arith.constant 0.000000e+00 : f32
    %39 = vector.broadcast %cst_23 : f32 to vector<8x256xf32>
    %40 = arith.select %38, %5, %39 : vector<8x256xi1>, vector<8x256xf32>
    %cst_24 = arith.constant dense<0.000000e+00> : vector<8xf32>
    %41 = vector.multi_reduction <add>, %40, %cst_24 [1] : vector<8x256xf32> to vector<8xf32>
    %42 = vector.shape_cast %41 : vector<8xf32> to vector<8x1xf32>
    %43 = arith.addf %36, %42 : vector<8x1xf32>
    %c0_25 = arith.constant 0 : index
    %c0_26 = arith.constant 0 : index
    %c0_27 = arith.constant 0 : index
    %44 = vector.load %arg8[%c0_25, %c0_26, %c0_27] : memref<1x8x1xf32, #tpu.memory_space<vmem>>, vector<1x8x1xf32>
    %45 = vector.shape_cast %44 : vector<1x8x1xf32> to vector<8x1xf32>
    %46 = vector.shape_cast %43 : vector<8x1xf32> to vector<1x8x1xf32>
    tpu.vector_store %arg8[%c0_25, %c0_26, %c0_27], %46 {strides = array<i32>} : memref<1x8x1xf32, #tpu.memory_space<vmem>>, vector<1x8x1xf32>,
    return
  }
  func.func @transform_0(%arg0: i32, %arg1: i32, %arg2: i32) -> (i32, i32) {
    %c0_i32 = arith.constant 0 : i32
    %c0_i32_0 = arith.constant 0 : i32
    return %arg1, %c0_i32 : i32, i32
  }
  func.func @transform_1(%arg0: i32, %arg1: i32, %arg2: i32) -> (i32, i32) {
    %c1_i32 = arith.constant 1 : i32
    %0 = arith.muli %arg0, %c1_i32 : i32
    %1 = arith.addi %0, %arg2 : i32
    %c0_i32 = arith.constant 0 : i32
    %c0_i32_0 = arith.constant 0 : i32
    return %c0_i32, %1 : i32, i32
  }
  func.func @transform_2(%arg0: i32, %arg1: i32, %arg2: i32) -> (i32, i32) {
    %c0_i32 = arith.constant 0 : i32
    %c0_i32_0 = arith.constant 0 : i32
    return %arg1, %c0_i32 : i32, i32
  }
  func.func @transform_3(%arg0: i32, %arg1: i32, %arg2: i32) -> (i32, i32, i32) {
    %c0_i32 = arith.constant 0 : i32
    %c0_i32_0 = arith.constant 0 : i32
    return %arg0, %arg1, %c0_i32 : i32, i32, i32
  }
  func.func @transform_4(%arg0: i32, %arg1: i32, %arg2: i32) -> (i32, i32, i32) {
    %c0_i32 = arith.constant 0 : i32
    %c0_i32_0 = arith.constant 0 : i32
    return %arg0, %arg1, %c0_i32 : i32, i32, i32
  }
  func.func @transform_5(%arg0: i32, %arg1: i32, %arg2: i32) -> (i32, i32, i32) {
    %c0_i32 = arith.constant 0 : i32
    %c0_i32_0 = arith.constant 0 : i32
    return %arg0, %arg1, %c0_i32 : i32, i32, i32
  }
}

</mosaic_0001>

<bundles_post_ra>
// kernel: tpu_custom_call.1
= control target key start
LH: loop header
LB: loop body
LE: loop exit
PB: predicated region body
PF: predicated region fallthrough
CT: control target
= control target key end

     0   :  { %11 = vsyncpa [#allocation3], 0  ;;  %s227_s18 = smov [#allocation2]   ;;  %s314_s0 = inlined_call_operand.vmem [shape: bf16[8,32], index: 0, kind: input, shape index: {}]   ;;  %s315_s1 = inlined_call_operand.hbm [shape: bf16[32,256], index: 1, kind: input, shape index: {}]   ;;  %s316_s2 = inlined_call_operand.vmem [shape: s32[8,1], index: 2, kind: input, shape index: {}]   ;;  %s317_s3 = inlined_call_operand.vmem [shape: f32[1,8,1], index: 3, kind: output, shape index: {0}]   ;;  %s318_s4 = inlined_call_operand.vmem [shape: f32[1,8,1], index: 4, kind: output, shape index: {1}]   ;;  %s319_s5 = inlined_call_operand.vmem [shape: f32[1,8,1], index: 5, kind: output, shape index: {2}]  }
   0x1   :  { %s23_s19 = sshll.u32 %s227_s18, 4  ;;  %s203_s22 = scalar_lea.hbm %s315_s1, 512  ;;  %s24_s19 = int_to_ptr.vmem [resolvable:$true] %s23_s19 }
   0x2   :  { %p204_p0 = scmp.ne.s32.totalorder %s315_s1, %s203_s22  ;;  %p207_p1 = scmp.lt.u32.totalorder %s203_s22, %s315_s1 }
   0x4   :  { %p209_p2 = pnand %p207_p1, %p204_p0 }
   0x6   :  { %212 = shalt.err (!%p209_p2)
}
   0x7   :  { %s213_s27 = scalar_lea.vmem %s24_s19, 512  ;;  %p218_p4 = scmp.lt.s32.totalorder %s24_s19, %s24_s19 }
   0x8   :  { %p214_p3 = scmp.ne.s32.totalorder %s24_s19, %s213_s27  ;;  %p219_p5 = scmp.lt.s32.totalorder %s213_s27, %s213_s27 }
   0xa   :  { %p220_p6 = por %p219_p5, %p218_p4 }
   0xc   :  { %p221_p7 = pnand %p220_p6, %p214_p3 }
   0xe   :  { %224 = shalt.err (!%p221_p7)
}
   0xf   :  { %s228_s28 = smov 128   ;;  %s229_s29 = smov 8  }
  0x10   :  { %29 = dma.hbm_to_vmem [thread:$0]  %s315_s1, 512, %s24_s19, [#allocation3], %s228_s28, %s228_s28, %s229_s29  }
  0x11   :  { %225 = dma.done.wait [#allocation3], 512  }
  0x12   :  { %226 = vsyncadd [#allocation3], 4294966784  ;;  %v230_v0 = vmov 0   ;;  %v191_v1 = vld [vmem:[#allocation2 + $0x4] ss:$8 sps:$4 sm:$0xff]   ;;  %vm71_vm0 = vcmask 261120   ;;  %v149_v8 = vlaneseq }
  0x13   :  { %107 = vmatprep.mubr.bf16.mxu0 %v230_v0  ;;  %190 = vset.pattern.permute.xlu1 %v230_v0  ;;  %v193_v2 = vld [vmem:[#allocation2] ss:$8 sps:$4 sm:$0xff]   ;;  %v194_v3 = vld [vmem:[#allocation2 + $0x14] ss:$8 sps:$4 sm:$0xff]   ;;  %v196_v4 = vld [vmem:[#allocation2 + $0x10] ss:$8 sps:$4 sm:$0xff]  }
  0x14   :  { %189 = vset.pattern.permute.xlu0 %v230_v0  ;;  %75 = vmatprep.subr.bf16.mxu0 %v191_v1  ;;  %v146_v5 = vld [vmem:[%s316_s2] sm:$0xff]  ;;  %vm42_vm1 = vcmask 7168   ;;  %v231_v7 = vmov -inf   ;;  %v150_v9 = vand.u32 127, %v149_v8  ;;  %v232_v20 = vmov 0.0  }
  0x15   :  { %76 = vmatpush1.bf16.msra.mxu0 %v193_v2  ;;  %154 = vperm.xlu1 %190, %v146_v5   ;;  %v46_v6 = vld [vmem:[%s314_s0] sm:$0xf]  ;;  %43 = vst.msk [vmem:[%s317_s3] sm:$0xff] %vm42_vm1, %v231_v7  ;;  %44 = vst.msk [vmem:[%s318_s4] sm:$0xff] %vm42_vm1, %v232_v20 }
  0x16   :  { %77 = vmatprep.subr.bf16.mxu0 %v194_v3  ;;  %v151_v10 = vadd.s32 128, %v150_v9  ;;  %45 = vst.msk [vmem:[%s319_s5] sm:$0xff] %vm42_vm1, %v232_v20 }
  0x19   :  { %78 = vmatpush1.bf16.msra.mxu0 %v196_v4 }
  0x1c   :  { %182 = vmatmul.mubr.msk.bf16.vlgmr.msra.gmra.mrb[0].mxu0 %vm71_vm0, %v46_v6  ;;  %v116_v21 = vld [vmem:[%s317_s3] sm:$0xff] }
  0x1d   :  { %v124_v35 = vld [vmem:[%s318_s4] sm:$0xff] }
  0x1e   :  { %v152_v39 = vld [vmem:[%s319_s5] sm:$0xff] }
  0x94   :  { %v155_v11 = vpop.permute.xlu1 %154 }
  0x95   :  { %vm156_vm2 = vcmp.eq.s32.totalorder %v150_v9, %v155_v11  ;;  %vm157_vm3 = vcmp.eq.s32.totalorder %v151_v10, %v155_v11 }
  0xef   :  { %v109_v12 = vpop.f32.mrb[0].mxu0 }
  0xf0   :  { %v111_v13 = vpop.f32.mrb[1].mxu0  ;;  %v158_v14 = vsel %vm156_vm2, %v109_v12, 0.0 }
  0xf1   :  { %v113_v15 = vpop.f32.mrb[2].mxu0  ;;  %v117_v16 = vmax.f32 %v109_v12, %v111_v13  ;;  %v159_v17 = vsel %vm157_vm3, %v111_v13, 0.0 }
  0xf2   :  { %v114_v18 = vpop.f32.mrb[3].mxu0  ;;  %v160_v19 = vadd.f32 %v159_v17, %v158_v14 }
  0xf3   :  { %118 = vmax.xlane.f32.xlu0 %v117_v16 }
 0x180   :  { %v119_v22 = vpop.xlane.xlu0 %118 }
 0x181   :  { %v120_v23 = vmax.f32 %v116_v21, %v119_v22 }
 0x183   :  { %v121_v24 = vsub.f32 %v116_v21, %v120_v23  ;;  %143 = vst.msk [vmem:[%s317_s3] sm:$0xff] %vm42_vm1, %v120_v23  ;;  %128 = vperm.xlu0 %189, %v120_v23  }
 0x185   :  { %v122_v33 = vmul.f32 1.442695, %v121_v24 }
 0x202   :  { %v129_v25 = vpop.permute.xlu0 %128 }
 0x203   :  { %v131_v26 = vsub.f32 %v109_v12, %v129_v25  ;;  %v132_v27 = vsub.f32 %v111_v13, %v129_v25 }
 0x205   :  { %v133_v28 = vmul.f32 1.442695, %v131_v26  ;;  %v135_v29 = vmul.f32 1.442695, %v132_v27 }
 0x207   :  { %197 = vpow2.f32 %v133_v28 }
 0x208   :  { %199 = vpow2.f32 %v135_v29 }
 0x209   :  { %201 = vpow2.f32 %v122_v33 }
 0x211   :  { %v198_v30 = vpop.eup %197 }
 0x212   :  { %v200_v31 = vpop.eup %199 }
 0x213   :  { %v137_v32 = vadd.f32 %v200_v31, %v198_v30  ;;  %v202_v34 = vpop.eup %201 }
 0x214   :  { %v125_v36 = vmul.f32 %v202_v34, %v124_v35 }
 0x215   :  { %138 = vadd.xlane.f32.xlu1 %v137_v32 }
 0x219   :  { %161 = vadd.xlane.f32.xlu1 %v160_v19 }
 0x2a2   :  { %v139_v37 = vpop.xlane.xlu1 %138 }
 0x2a3   :  { %v140_v38 = vadd.f32 %v139_v37, %v125_v36 }
 0x2a5   :  { %142 = vst.msk [vmem:[%s318_s4] sm:$0xff] %vm42_vm1, %v140_v38 }
 0x2a6   :  { %v162_v40 = vpop.xlane.xlu1 %161 }
 0x2a7   :  { %v163_v41 = vadd.f32 %v162_v40, %v152_v39 }
 0x2a9   :  { %164 = vst.msk [vmem:[%s319_s5] sm:$0xff] %vm42_vm1, %v163_v41 }
 0x2aa   :  { %177 = vsyncpa [#allocation3], 1 }

</bundles_post_ra>
